<compile_context>
chip_gen: v6e
topology: v6e:2x2x1
jax: 0.10.0
libtpu: 0.0.40
codegen_flags: <defaults>
</compile_context>

<pallas_src>
import functools

import jax
import jax.numpy as jnp
from jax.experimental import pallas as pl
from jax.experimental.pallas import tpu as pltpu

LANES = 128


def _round_up(x, m):
    return ((x + m - 1) // m) * m


def a2c_kernel(num_actions, x_ref, ws_ref, wh_ref, bh_ref, bz_ref, out_ref):
    x = x_ref[...]                                            # [TB, S]   bf16

    # shared network: Linear + ReLU (bf16 MXU, f32 accumulate, f32 VPU math)
    h = jnp.dot(x, ws_ref[...], preferred_element_type=jnp.float32)
    h = jnp.maximum(h + bh_ref[...], 0.0)                     # [TB, Hp]  f32

    # fused policy|value head: one lane-dense MXU pass -> [TB, OUT]
    z = jnp.dot(h.astype(wh_ref.dtype), wh_ref[...],
                preferred_element_type=jnp.float32) + bz_ref[...]

    # masked softmax over policy lanes [0, num_actions)
    lane = jax.lax.broadcasted_iota(jnp.int32, z.shape, 1)
    is_policy = lane < num_actions
    logits = jnp.where(is_policy, z, -1e30)                   # pad lanes -> 0 after exp
    m = jnp.max(logits, axis=-1, keepdims=True)
    e = jnp.exp(logits - m)
    s = jnp.sum(e, axis=-1, keepdims=True)
    r = pl.reciprocal(s, approx=True)                         # EUP slot (free)
    r = r * (2.0 - s * r)                                     # one Newton step
    probs = e * r

    # single full-width store: policy lanes = probs, lane A = value, rest = 0
    out_ref[...] = jnp.where(is_policy, probs, z)


def prepare_params(ws, bs, wp, bp, wv, bv):
    """One-time packing/padding (PyTorch Linear convention: weight [out, in]).
    Done once outside the per-step hot path."""
    H = ws.shape[0]
    A = wp.shape[0]
    Hp = _round_up(H, LANES)
    OUT = _round_up(A + 1, LANES)

    # shared layer [S, Hp], bf16
    ws_t = jnp.pad(ws.T.astype(jnp.float32), ((0, 0), (0, Hp - H)))
    ws_t = ws_t.astype(jnp.bfloat16)
    bh = jnp.pad(bs.astype(jnp.float32), (0, Hp - H)).reshape(1, Hp)

    # fused policy|value head [Hp, OUT], bf16  (col 0..A-1 policy, col A value)
    w_heads = jnp.concatenate([wp.T, wv.T], axis=1).astype(jnp.float32)
    w_heads = jnp.pad(w_heads, ((0, Hp - H), (0, OUT - (A + 1))))
    w_heads = w_heads.astype(jnp.bfloat16)
    bz = jnp.pad(jnp.concatenate([bp, bv]).astype(jnp.float32),
                 (0, OUT - (A + 1))).reshape(1, OUT)
    return ws_t, w_heads, bh, bz, A


@functools.partial(jax.jit, static_argnums=(5,))
def a2c_forward(state, ws_t, w_heads, bh, bz, num_actions):
    B, S = state.shape
    Hp = ws_t.shape[1]
    OUT = w_heads.shape[1]

    x = state.astype(jnp.bfloat16)          # bf16 MXU input, halved HBM bytes

    # Batch tile: big tiles amortize the ~0.35 us/step overhead; a 2-step
    # "parallel" grid lets v7x's two TensorCores both get work.
    cap = 1024
    b8 = _round_up(B, 8)
    if b8 <= 128:
        TB = b8                                   # tiny batch: single block
    elif b8 <= 2 * cap:
        TB = _round_up((b8 + 1) // 2, 8)          # exactly 2 grid steps
    else:
        TB = cap
    grid = (pl.cdiv(B, TB),)                      # ragged last block, no jnp.pad

    flops = 2 * B * (S * Hp + Hp * OUT)
    bytes_accessed = (B * S * 2 + S * Hp * 2 + Hp * OUT * 2
                      + (Hp + OUT) * 4 + B * OUT * 4)

    out = pl.pallas_call(
        functools.partial(a2c_kernel, num_actions),
        grid=grid,
        in_specs=[
            pl.BlockSpec((TB, S), lambda i: (i, 0)),      # state tile (streamed)
            pl.BlockSpec((S, Hp), lambda i: (0, 0)),      # shared weight (resident)
            pl.BlockSpec((Hp, OUT), lambda i: (0, 0)),    # fused head weight
            pl.BlockSpec((1, Hp), lambda i: (0, 0)),      # shared bias (f32)
            pl.BlockSpec((1, OUT), lambda i: (0, 0)),     # head bias   (f32)
        ],
        out_specs=pl.BlockSpec((TB, OUT), lambda i: (i, 0)),
        out_shape=jax.ShapeDtypeStruct((B, OUT), jnp.float32),
        compiler_params=pltpu.CompilerParams(
            dimension_semantics=("parallel",)),           # megacore on v7x
        cost_estimate=pl.CostEstimate(
            flops=flops,
            transcendentals=B * (num_actions + 1),
            bytes_accessed=bytes_accessed),
    )(x, ws_t, w_heads, bh, bz)

    probs = out[:, :num_actions]                 # [B, A]
    value = out[:, num_actions:num_actions + 1]  # [B, 1]
    return probs, value


def a2c_reference(state, ws, bs, wp, bp, wv, bv):
    h = jnp.maximum(state @ ws.T + bs, 0.0)
    logits = h @ wp.T + bp
    probs = jax.nn.softmax(logits, axis=-1)
    value = h @ wv.T + bv
    return probs, value


if __name__ == "__main__":
    B = 8          # batch
    S = 16         # state (input) dim
    H = 32         # network_size (shared network hidden width)
    A = 4          # action_size

    key = jax.random.PRNGKey(0)
    ks = jax.random.split(key, 7)
    state = jax.random.normal(ks[0], (B, S), dtype=jnp.float32)

    # deterministic parameter init (PyTorch Linear weight convention: [out, in])
    ws = jax.random.normal(ks[1], (H, S), dtype=jnp.float32) * 0.1
    bs = jax.random.normal(ks[2], (H,), dtype=jnp.float32) * 0.1
    wp = jax.random.normal(ks[3], (A, H), dtype=jnp.float32) * 0.1
    bp = jax.random.normal(ks[4], (A,), dtype=jnp.float32) * 0.1
    wv = jax.random.normal(ks[5], (1, H), dtype=jnp.float32) * 0.1
    bv = jax.random.normal(ks[6], (1,), dtype=jnp.float32) * 0.1

    # one-time packing/padding/casting, outside the per-call hot path
    ws_t, w_heads, bh, bz, num_actions = prepare_params(ws, bs, wp, bp, wv, bv)

    probs, value = jax.block_until_ready(
        a2c_forward(state, ws_t, w_heads, bh, bz, num_actions))

    probs_ref, value_ref = a2c_reference(state, ws, bs, wp, bp, wv, bv)

    assert probs.shape == (B, A) and value.shape == (B, 1)
    # bf16 MXU inputs -> compare against the f32 reference with bf16-level tol
    assert jnp.allclose(probs, probs_ref, atol=3e-2, rtol=3e-2)
    assert jnp.allclose(value, value_ref, atol=3e-2, rtol=3e-2)
    # softmax math is f32 with a Newton-refined reciprocal: rows sum to 1
    assert jnp.allclose(jnp.sum(probs, axis=-1), 1.0, atol=1e-4)

    print("KERNEL_OK")
</pallas_src>

<mosaic_0001>
module attributes {stable_mosaic.version = 11 : i64} {
  func.func @a2c_kernel(%arg0: i32, %arg1: memref<8x16xbf16, #tpu.memory_space<vmem>>, %arg2: memref<16x128xbf16, #tpu.memory_space<vmem>>, %arg3: memref<128x128xbf16, #tpu.memory_space<vmem>>, %arg4: memref<1x128xf32, #tpu.memory_space<vmem>>, %arg5: memref<1x128xf32, #tpu.memory_space<vmem>>, %arg6: memref<8x128xf32, #tpu.memory_space<vmem>>) attributes {dimension_semantics = [#tpu.dimension_semantics<parallel>], iteration_bounds = array<i64: 1>, scalar_prefetch = 0 : i64, scratch_operands = 0 : i64, tpu.core_type = #tpu.core_type<tc>, window_params = [{transform_indices = @transform_0, window_bounds = array<i64: 8, 16>}, {pipeline_mode = #tpu.pipeline_mode<synchronous>, transform_indices = @transform_1, window_bounds = array<i64: 16, 128>}, {pipeline_mode = #tpu.pipeline_mode<synchronous>, transform_indices = @transform_2, window_bounds = array<i64: 128, 128>}, {pipeline_mode = #tpu.pipeline_mode<synchronous>, transform_indices = @transform_3, window_bounds = array<i64: 1, 128>}, {pipeline_mode = #tpu.pipeline_mode<synchronous>, transform_indices = @transform_4, window_bounds = array<i64: 1, 128>}, {transform_indices = @transform_5, window_bounds = array<i64: 8, 128>}]} {
    %c0 = arith.constant 0 : index
    %c0_0 = arith.constant 0 : index
    %0 = vector.load %arg1[%c0, %c0_0] : memref<8x16xbf16, #tpu.memory_space<vmem>>, vector<8x16xbf16>
    %c0_1 = arith.constant 0 : index
    %c0_2 = arith.constant 0 : index
    %1 = vector.load %arg2[%c0_1, %c0_2] : memref<16x128xbf16, #tpu.memory_space<vmem>>, vector<16x128xbf16>
    %cst = arith.constant dense<0.000000e+00> : vector<8x128xf32>
    %2 = tpu.matmul %0, %1, %cst {dimension_numbers = #tpu.dot_dimension_numbers<[1], [0], [0], [1], [0, 0, 1, 1], [], []>} : vector<8x16xbf16>, vector<16x128xbf16>, vector<8x128xf32> -> vector<8x128xf32>
    %c0_3 = arith.constant 0 : index
    %c0_4 = arith.constant 0 : index
    %3 = vector.load %arg4[%c0_3, %c0_4] : memref<1x128xf32, #tpu.memory_space<vmem>>, vector<1x128xf32>
    %4 = vector.broadcast %3 : vector<1x128xf32> to vector<8x128xf32>
    %5 = arith.addf %2, %4 : vector<8x128xf32>
    %cst_5 = arith.constant 0.000000e+00 : f32
    %6 = vector.broadcast %cst_5 : f32 to vector<8x128xf32>
    %7 = arith.maximumf %5, %6 : vector<8x128xf32>
    %8 = arith.truncf %7 : vector<8x128xf32> to vector<8x128xbf16>
    %c0_6 = arith.constant 0 : index
    %c0_7 = arith.constant 0 : index
    %9 = vector.load %arg3[%c0_6, %c0_7] : memref<128x128xbf16, #tpu.memory_space<vmem>>, vector<128x128xbf16>
    %cst_8 = arith.constant dense<0.000000e+00> : vector<8x128xf32>
    %10 = tpu.matmul %8, %9, %cst_8 {dimension_numbers = #tpu.dot_dimension_numbers<[1], [0], [0], [1], [0, 0, 1, 1], [], []>} : vector<8x128xbf16>, vector<128x128xbf16>, vector<8x128xf32> -> vector<8x128xf32>
    %c0_9 = arith.constant 0 : index
    %c0_10 = arith.constant 0 : index
    %11 = vector.load %arg5[%c0_9, %c0_10] : memref<1x128xf32, #tpu.memory_space<vmem>>, vector<1x128xf32>
    %12 = vector.broadcast %11 : vector<1x128xf32> to vector<8x128xf32>
    %13 = arith.addf %10, %12 : vector<8x128xf32>
    %14 = tpu.iota {dimensions = array<i32: 1>} : vector<8x128xi32>
    %c4_i32 = arith.constant 4 : i32
    %15 = vector.broadcast %c4_i32 : i32 to vector<8x128xi32>
    %16 = arith.cmpi slt, %14, %15 : vector<8x128xi32>
    %cst_11 = arith.constant -1.000000e+30 : f32
    %17 = vector.broadcast %cst_11 : f32 to vector<8x128xf32>
    %18 = arith.select %16, %13, %17 : vector<8x128xi1>, vector<8x128xf32>
    %cst_12 = arith.constant dense<0xFF800000> : vector<8xf32>
    %19 = vector.multi_reduction <maximumf>, %18, %cst_12 [1] : vector<8x128xf32> to vector<8xf32>
    %20 = vector.shape_cast %19 : vector<8xf32> to vector<8x1xf32>
    %21 = vector.broadcast %20 : vector<8x1xf32> to vector<8x128xf32>
    %22 = arith.subf %18, %21 : vector<8x128xf32>
    %23 = math.exp %22 : vector<8x128xf32>
    %cst_13 = arith.constant dense<0.000000e+00> : vector<8xf32>
    %24 = vector.multi_reduction <add>, %23, %cst_13 [1] : vector<8x128xf32> to vector<8xf32>
    %25 = vector.shape_cast %24 : vector<8xf32> to vector<8x1xf32>
    %26 = tpu.reciprocal %25 {approx = true} : vector<8x1xf32> -> vector<8x1xf32>
    %27 = arith.mulf %25, %26 : vector<8x1xf32>
    %cst_14 = arith.constant 2.000000e+00 : f32
    %28 = vector.broadcast %cst_14 : f32 to vector<8x1xf32>
    %29 = arith.subf %28, %27 : vector<8x1xf32>
    %30 = arith.mulf %26, %29 : vector<8x1xf32>
    %31 = vector.broadcast %30 : vector<8x1xf32> to vector<8x128xf32>
    %32 = arith.mulf %23, %31 : vector<8x128xf32>
    %33 = arith.select %16, %32, %13 : vector<8x128xi1>, vector<8x128xf32>
    %c0_15 = arith.constant 0 : index
    %c0_16 = arith.constant 0 : index
    %34 = vector.load %arg6[%c0_15, %c0_16] : memref<8x128xf32, #tpu.memory_space<vmem>>, vector<8x128xf32>
    tpu.vector_store %arg6[%c0_15, %c0_16], %33 {strides = array<i32>} : memref<8x128xf32, #tpu.memory_space<vmem>>, vector<8x128xf32>,
    return
  }
  func.func @transform_0(%arg0: i32) -> (i32, i32) {
    %c0_i32 = arith.constant 0 : i32
    %c0_i32_0 = arith.constant 0 : i32
    return %arg0, %c0_i32 : i32, i32
  }
  func.func @transform_1(%arg0: i32) -> (i32, i32) {
    %c0_i32 = arith.constant 0 : i32
    %c0_i32_0 = arith.constant 0 : i32
    %c0_i32_1 = arith.constant 0 : i32
    return %c0_i32, %c0_i32_0 : i32, i32
  }
  func.func @transform_2(%arg0: i32) -> (i32, i32) {
    %c0_i32 = arith.constant 0 : i32
    %c0_i32_0 = arith.constant 0 : i32
    %c0_i32_1 = arith.constant 0 : i32
    return %c0_i32, %c0_i32_0 : i32, i32
  }
  func.func @transform_3(%arg0: i32) -> (i32, i32) {
    %c0_i32 = arith.constant 0 : i32
    %c0_i32_0 = arith.constant 0 : i32
    %c0_i32_1 = arith.constant 0 : i32
    return %c0_i32, %c0_i32_0 : i32, i32
  }
  func.func @transform_4(%arg0: i32) -> (i32, i32) {
    %c0_i32 = arith.constant 0 : i32
    %c0_i32_0 = arith.constant 0 : i32
    %c0_i32_1 = arith.constant 0 : i32
    return %c0_i32, %c0_i32_0 : i32, i32
  }
  func.func @transform_5(%arg0: i32) -> (i32, i32) {
    %c0_i32 = arith.constant 0 : i32
    %c0_i32_0 = arith.constant 0 : i32
    return %arg0, %c0_i32 : i32, i32
  }
}

</mosaic_0001>

<bundles_post_ra>
// kernel: a2c_forward.1
= control target key start
LH: loop header
LB: loop body
LE: loop exit
PB: predicated region body
PF: predicated region fallthrough
CT: control target
= control target key end

     0   :  { %10 = vsyncpa [#allocation3], 0  ;;  %s320_s18 = smov [#allocation2]   ;;  %s375_s0 = inlined_call_operand.vmem [shape: bf16[8,16], index: 0, kind: input, shape index: {}]   ;;  %s376_s1 = inlined_call_operand.vmem [shape: bf16[16,128], index: 1, kind: input, shape index: {}]   ;;  %s377_s2 = inlined_call_operand.hbm [shape: bf16[128,128], index: 2, kind: input, shape index: {}]   ;;  %s378_s3 = inlined_call_operand.vmem [shape: f32[1,128], index: 3, kind: input, shape index: {}]   ;;  %s379_s4 = inlined_call_operand.vmem [shape: f32[1,128], index: 4, kind: input, shape index: {}]   ;;  %s380_s5 = inlined_call_operand.vmem [shape: f32[8,128], index: 5, kind: output, shape index: {}]  }
   0x1   :  { %s20_s19 = sshll.u32 %s320_s18, 4  ;;  %s21_s19 = int_to_ptr.vmem [resolvable:$true] %s20_s19 }
   0x2   :  { %s306_s20 = scalar_lea.vmem %s21_s19, 1024  ;;  %p311_p1 = scmp.lt.s32.totalorder %s21_s19, %s21_s19 }
   0x3   :  { %p307_p0 = scmp.ne.s32.totalorder %s21_s19, %s306_s20  ;;  %p312_p2 = scmp.lt.s32.totalorder %s306_s20, %s306_s20 }
   0x5   :  { %p313_p3 = por %p312_p2, %p311_p1 }
   0x7   :  { %p314_p4 = pnand %p313_p3, %p307_p0 }
   0x9   :  { %317 = shalt.err (!%p314_p4)
}
   0xa   :  { %s321_s21 = smov 64   ;;  %s322_s22 = smov 4  }
   0xb   :  { %26 = dma.hbm_to_vmem [thread:$0]  %s377_s2, 1024, %s21_s19, [#allocation3], %s321_s21, %s321_s21, %s322_s22  }
   0xc   :  { %318 = dma.done.wait [#allocation3], 1024  }
   0xd   :  { %319 = vsyncadd [#allocation3], 4294966272  ;;  %v323_v0 = vmov 0.0   ;;  %vm324_vm0 = vmmov 0   ;;  %v285_v1 = vld [vmem:[%s376_s1] sm:$0xff]   ;;  %vm51_vm1 = vcmask 130048   ;;  %v208_v19 = vlaneseq }
   0xe   :  { %254 = vmatprep.subr.bf16.mxu0 %v323_v0  ;;  %256 = vmatprep.mubr.msk.bf16.mxu0 %vm324_vm0, %v323_v0  ;;  %v35_v2 = vld [vmem:[%s375_s0] sm:$0xf]  ;;  %v286_v3 = vld [vmem:[#allocation2 + $0x38] sm:$0xff]   ;;  %v287_v4 = vld [vmem:[#allocation2 + $0x30] sm:$0xff]  }
   0xf   :  { %260 = vmatprep.subr.bf16.mxu1 %v323_v0  ;;  %276 = vmatprep.mubr.msk.bf16.mxu1 %vm324_vm0, %v323_v0  ;;  %v288_v5 = vld [vmem:[#allocation2 + $0x28] sm:$0xff]   ;;  %v289_v6 = vld [vmem:[#allocation2 + $0x20] sm:$0xff]   ;;  %v290_v7 = vld [vmem:[#allocation2 + $0x18] sm:$0xff]   ;;  %v209_v20 = vand.u32 127, %v208_v19 }
  0x10   :  { %255 = vmatpush3.bf16.msra.mxu0 %v285_v1  ;;  %261 = vmatpush3.bf16.msra.mxu1 %v286_v3  ;;  %v291_v8 = vld [vmem:[#allocation2 + $0x10] sm:$0xff]   ;;  %v292_v9 = vld [vmem:[#allocation2 + $0x8] sm:$0xff]   ;;  %v293_v10 = vld [vmem:[#allocation2] sm:$0xff]  }
  0x11   :  { %262 = vmatprep.subr.bf16.mxu1 %v323_v0  ;;  %v231_v11 = vld [vmem:[%s378_s3] ss:$0 sm:$0xff]  ;;  %vm210_vm2 = vcmp.lt.s32.totalorder %v209_v20, 4 }
  0x12   :  { %v234_v21 = vld [vmem:[%s379_s4] ss:$0 sm:$0xff] }
  0x13   :  { %257 = vmatmul.mubr.msk.bf16.vlgmr.msra.gmra.mxu0 %vm51_vm1, %v35_v2 }
  0x14   :  { %263 = vmatpush3.bf16.msra.mxu1 %v287_v4 }
  0x15   :  { %264 = vmatprep.subr.bf16.mxu1 %v323_v0 }
  0x18   :  { %265 = vmatpush3.bf16.msra.mxu1 %v288_v5 }
  0x19   :  { %266 = vmatprep.subr.bf16.mxu1 %v323_v0 }
  0x1c   :  { %267 = vmatpush3.bf16.msra.mxu1 %v289_v6 }
  0x1d   :  { %268 = vmatprep.subr.bf16.mxu1 %v323_v0 }
  0x20   :  { %269 = vmatpush3.bf16.msra.mxu1 %v290_v7 }
  0x21   :  { %270 = vmatprep.subr.bf16.mxu1 %v323_v0 }
  0x24   :  { %271 = vmatpush3.bf16.msra.mxu1 %v291_v8 }
  0x25   :  { %272 = vmatprep.subr.bf16.mxu1 %v323_v0 }
  0x28   :  { %273 = vmatpush3.bf16.msra.mxu1 %v292_v9 }
  0x29   :  { %274 = vmatprep.subr.bf16.mxu1 %v323_v0 }
  0x2c   :  { %275 = vmatpush3.bf16.msra.mxu1 %v293_v10 }
  0xd3   :  { %v89_v12 = vpop.f32.mrf.mxu0 }
  0xd4   :  { %v90_v13 = vadd.f32 %v231_v11, %v89_v12 }
  0xd5   :  { %v258_v14 = vpop.f32.mrf.mxu0 }
  0xd6   :  { %v95_v15 = vmax.f32 %v90_v13, 0.0 }
  0xd7   :  { %v92_v16 = vpop.f32.mrf.mxu0 }
  0xd8   :  { %v96_v17 = vpack.c.bf16 %v95_v15, %v95_v15 }
  0xd9   :  { %v259_v18 = vpop.f32.mrf.mxu0 }
  0xda   :  { %277 = vmatmul.mubr.bf16.vlgmr.msra.gmra.mxu1 %v96_v17 }
 0x19a   :  { %v202_v22 = vpop.f32.mrf.mxu1 }
 0x19b   :  { %v203_v23 = vadd.f32 %v234_v21, %v202_v22 }
 0x19c   :  { %v278_v24 = vpop.f32.mrf.mxu1 }
 0x19d   :  { %v211_v25 = vsel %vm210_vm2, %v203_v23, -1e+30 }
 0x19e   :  { %212 = vmax.xlane.f32.xlu0 %v211_v25  ;;  %v205_v26 = vpop.f32.mrf.mxu1 }
 0x1a0   :  { %v279_v27 = vpop.f32.mrf.mxu1 }
 0x227   :  { %v213_v28 = vpop.xlane.xlu0 %212 }
 0x228   :  { %v214_v29 = vsub.f32 %v211_v25, %v213_v28 }
 0x22a   :  { %v215_v30 = vmul.f32 1.442695, %v214_v29 }
 0x22c   :  { %294 = vpow2.f32 %v215_v30 }
 0x239   :  { %v295_v31 = vpop.eup %294 }
 0x23a   :  { %217 = vadd.xlane.f32.xlu0 %v295_v31 }
 0x2c3   :  { %v218_v32 = vpop.xlane.xlu0 %217 }
 0x2c4   :  { %296 = vrcp.f32 %v218_v32 }
 0x2d1   :  { %v297_v33 = vpop.eup %296 }
 0x2d2   :  { %v220_v34 = vmul.f32 %v297_v33, %v218_v32 }
 0x2d4   :  { %v221_v35 = vsub.f32 2.0, %v220_v34 }
 0x2d6   :  { %v222_v36 = vmul.f32 %v297_v33, %v221_v35 }
 0x2d8   :  { %v223_v37 = vmul.f32 %v295_v31, %v222_v36 }
 0x2da   :  { %v224_v38 = vsel %vm210_vm2, %v223_v37, %v203_v23 }
 0x2db   :  { %225 = vst [vmem:[%s380_s5] sm:$0xff] %v224_v38 }
 0x2dc   :  { %230 = vsyncpa [#allocation3], 1 }

</bundles_post_ra>
